<compile_context>
chip_gen: v5e
topology: v5e:2x2
jax: 0.10.0
libtpu: 0.0.40
codegen_flags: <defaults>
</compile_context>

<pallas_src>
import jax
import jax.numpy as jnp
from jax.experimental import pallas as pl
from jax.experimental.pallas import tpu as pltpu


# ----------------------------------------------------------------------------
# Kernels
# ----------------------------------------------------------------------------
def _gcn_layer1_kernel(adj_ref, x_ref, w1_ref, b1_ref, h1_ref):
    """h1[tile] = relu((Â[tile,:] @ X) @ W1 + b1)   (reassociated: F < H)."""
    ax = jnp.dot(adj_ref[...], x_ref[...],                 # bf16 x bf16 -> f32
                 preferred_element_type=jnp.float32)        # (TM, F)
    h = jnp.dot(ax, w1_ref[...],
                preferred_element_type=jnp.float32) + b1_ref[...]
    h1_ref[...] = jnp.maximum(h, 0.0).astype(h1_ref.dtype)


def _gcn_layer2_head_kernel(adj_ref, h1_ref, w2_ref, b2_ref, w3_ref, b3_ref,
                            w4_ref, b4_ref, emb_ref, prob_ref):
    """Second GCN layer + MLP community head + softmax for one row tile."""
    agg = jnp.dot(adj_ref[...], h1_ref[...],               # bf16 x bf16 -> f32
                  preferred_element_type=jnp.float32)       # (TM, H)
    h2 = jnp.dot(agg, w2_ref[...],
                 preferred_element_type=jnp.float32) + b2_ref[...]   # (TM, HP)
    h2 = jnp.maximum(h2, 0.0)                               # padded cols stay 0
    emb_ref[...] = h2.astype(emb_ref.dtype)

    z = jnp.dot(h2, w3_ref[...],
                preferred_element_type=jnp.float32) + b3_ref[...]
    z = jnp.maximum(z, 0.0)
    logits = jnp.dot(z, w4_ref[...],
                     preferred_element_type=jnp.float32) + b4_ref[...]  # (TM, CP)
    # Padded logit columns carry a -1e30 bias -> exp underflows to exactly 0,
    # so softmax over the padded slab equals softmax over the real C classes.
    m = jnp.max(logits, axis=1, keepdims=True)
    e = jnp.exp(logits - m)
    denom = jnp.sum(e, axis=1, keepdims=True)
    prob_ref[...] = (e * pl.reciprocal(denom, approx=True)).astype(prob_ref.dtype)


# ----------------------------------------------------------------------------
# Wrapper
# ----------------------------------------------------------------------------
def _round_up(x, m):
    return (x + m - 1) // m * m


def _vmem_limit_bytes():
    """Per-generation VMEM budget (leave headroom; never the full 64 MiB on v7x)."""
    cap = 64 << 20
    try:
        info = pltpu.get_tpu_info()
        cap = int(getattr(info, "vmem_capacity_bytes", cap))
    except Exception:
        pass
    return min(cap * 3 // 4, 100 << 20)


def _choose_row_tile(n, vmem_budget):
    """Largest 128-multiple row tile whose double-buffered bf16 Â tile fits."""
    ncols = _round_up(n, 128)
    row_bytes = ncols * 2  # bf16
    for tm in (512, 256, 128):
        if n >= tm and 2 * tm * row_bytes <= vmem_budget // 2:
            return tm
    return _round_up(min(n, 128), 8)


def _pad_last(a, to, fill=0.0):
    pad = to - a.shape[-1]
    if pad <= 0:
        return a
    return jnp.pad(a, ((0, 0), (0, pad)), constant_values=fill)


def _pad_first(a, to, fill=0.0):
    pad = to - a.shape[0]
    if pad <= 0:
        return a
    return jnp.pad(a, ((0, pad), (0, 0)), constant_values=fill)


def community_detection_gnn_forward(adj_norm, x, params):
    """Run the GNN forward pass. Returns (embeddings [N,H], probs [N,C])."""
    N, F = x.shape
    H = params["w1"].shape[1]          # hidden_dim
    H2 = params["w3"].shape[1]         # hidden_dim // 2
    C = params["w4"].shape[1]          # num_communities

    vmem_limit = _vmem_limit_bytes()
    TM = _choose_row_tile(N, vmem_limit)
    NP = _round_up(N, TM)              # padded node count (rows & contraction)
    HP = _round_up(H, 128)             # lane-dense embedding slab width
    CP = _round_up(C, 128)             # lane-dense probability slab width

    # O(N^2) adjacency and streamed activations shipped as bf16 (f32 accumulate).
    adj_p = jnp.zeros((NP, NP), jnp.bfloat16).at[:N, :N].set(
        adj_norm.astype(jnp.bfloat16))
    x_p = jnp.zeros((NP, F), jnp.bfloat16).at[:N, :].set(x.astype(jnp.bfloat16))

    w1, b1 = params["w1"], params["b1"]
    w2p = _pad_last(params["w2"], HP)                  # zero cols -> h2 pad = 0
    b2p = _pad_last(params["b2"], HP)
    w3p = _pad_first(params["w3"], HP)                 # zero rows -> z unchanged
    b3 = params["b3"]
    w4p = _pad_last(params["w4"], CP)                  # zero cols
    b4p = _pad_last(params["b4"], CP, fill=-1e30)      # mask padded logits

    grid = (NP // TM,)
    cparams = pltpu.CompilerParams(
        dimension_semantics=("parallel",),             # v7x megacore splits tiles
        vmem_limit_bytes=vmem_limit,
    )

    # ---- Stage A: GCNConv layer 1 -> h1 (bf16, consumed by stage B) ---------
    h1 = pl.pallas_call(
        _gcn_layer1_kernel,
        out_shape=jax.ShapeDtypeStruct((NP, H), jnp.bfloat16),
        grid=grid,
        in_specs=[
            pl.BlockSpec((TM, NP), lambda i: (i, 0)),   # Â row tile (streamed)
            pl.BlockSpec((NP, F), lambda i: (0, 0)),    # X (resident)
            pl.BlockSpec((F, H), lambda i: (0, 0)),
            pl.BlockSpec((1, H), lambda i: (0, 0)),
        ],
        out_specs=pl.BlockSpec((TM, H), lambda i: (i, 0)),
        compiler_params=cparams,
    )(adj_p, x_p, w1, b1)

    # ---- Stage B: GCNConv layer 2 + community classifier + softmax ---------
    emb_p, prob_p = pl.pallas_call(
        _gcn_layer2_head_kernel,
        out_shape=(jax.ShapeDtypeStruct((NP, HP), jnp.float32),
                   jax.ShapeDtypeStruct((NP, CP), jnp.float32)),
        grid=grid,
        in_specs=[
            pl.BlockSpec((TM, NP), lambda i: (i, 0)),   # Â row tile (streamed)
            pl.BlockSpec((NP, H), lambda i: (0, 0)),    # h1 (resident)
            pl.BlockSpec((H, HP), lambda i: (0, 0)),
            pl.BlockSpec((1, HP), lambda i: (0, 0)),
            pl.BlockSpec((HP, H2), lambda i: (0, 0)),
            pl.BlockSpec((1, H2), lambda i: (0, 0)),
            pl.BlockSpec((H2, CP), lambda i: (0, 0)),
            pl.BlockSpec((1, CP), lambda i: (0, 0)),
        ],
        out_specs=(pl.BlockSpec((TM, HP), lambda i: (i, 0)),
                   pl.BlockSpec((TM, CP), lambda i: (i, 0))),
        compiler_params=cparams,
    )(adj_p, h1, w2p, b2p, w3p, b3, w4p, b4p)

    # Slice lane-dense padded slabs back to the module's logical shapes.
    return emb_p[:N, :H], prob_p[:N, :C]


# ----------------------------------------------------------------------------
# Glue (plain JAX) + reference
# ----------------------------------------------------------------------------
def build_normalized_adjacency(edge_index, num_nodes):
    """Dense D^-1/2 (A + I) D^-1/2 (deduped edges, exactly one self-loop/node)."""
    src, dst = edge_index[0], edge_index[1]
    adj = jnp.zeros((num_nodes, num_nodes), jnp.float32)
    adj = adj.at[dst, src].set(1.0)                       # dedupe duplicate edges
    diag = jnp.arange(num_nodes)
    adj = adj.at[diag, diag].set(1.0)                     # single self-loop per node
    deg = adj.sum(axis=1)
    dinv = jnp.where(deg > 0, jax.lax.rsqrt(deg), 0.0)
    return adj * dinv[:, None] * dinv[None, :]


def init_params(key, input_dim, hidden_dim, num_communities):
    """Deterministic synthetic parameter init (shapes per the module __init__)."""
    ks = jax.random.split(key, 4)
    h2 = hidden_dim // 2

    def glorot(k, fan_in, fan_out):
        lim = jnp.sqrt(6.0 / (fan_in + fan_out))
        return jax.random.uniform(k, (fan_in, fan_out), jnp.float32, -lim, lim)

    return {
        "w1": glorot(ks[0], input_dim, hidden_dim),
        "b1": jnp.zeros((1, hidden_dim), jnp.float32),
        "w2": glorot(ks[1], hidden_dim, hidden_dim),
        "b2": jnp.zeros((1, hidden_dim), jnp.float32),
        "w3": glorot(ks[2], hidden_dim, h2),
        "b3": jnp.full((1, h2), 0.01, jnp.float32),
        "w4": glorot(ks[3], h2, num_communities),
        "b4": jnp.full((1, num_communities), 0.01, jnp.float32),
    }


def _reference_forward(adj_norm, x, params):
    """Pure-JAX f32 reference of the module forward (eval mode)."""
    h1 = jax.nn.relu(adj_norm @ (x @ params["w1"]) + params["b1"])
    h2 = jax.nn.relu(adj_norm @ (h1 @ params["w2"]) + params["b2"])
    z = jax.nn.relu(h2 @ params["w3"] + params["b3"])
    logits = z @ params["w4"] + params["b4"]
    return h2, jax.nn.softmax(logits, axis=1)


if __name__ == "__main__":
    # Small, module-consistent shapes.
    N = 128
    INPUT_DIM = 16
    HIDDEN_DIM = 64
    NUM_COMMUNITIES = 10
    NUM_EDGES = 512

    key = jax.random.PRNGKey(0)
    k_x, k_e, k_p = jax.random.split(key, 3)

    x = jax.random.normal(k_x, (N, INPUT_DIM), jnp.float32)
    edge_index = jax.random.randint(k_e, (2, NUM_EDGES), 0, N, dtype=jnp.int32)

    params = init_params(k_p, INPUT_DIM, HIDDEN_DIM, NUM_COMMUNITIES)
    adj_norm = build_normalized_adjacency(edge_index, N)

    embeddings, community_probs = community_detection_gnn_forward(adj_norm, x, params)
    jax.block_until_ready((embeddings, community_probs))

    assert embeddings.shape == (N, HIDDEN_DIM)
    assert community_probs.shape == (N, NUM_COMMUNITIES)
    # softmax rows sum to ~1 (approx reciprocal in the kernel)
    assert bool(jnp.allclose(community_probs.sum(axis=1), 1.0, atol=5e-3))

    # correctness vs pure-JAX f32 reference (bf16 adjacency -> loose tolerance)
    ref_emb, ref_probs = _reference_forward(adj_norm, x, params)
    assert bool(jnp.allclose(embeddings, ref_emb, rtol=0.1, atol=0.1))
    assert bool(jnp.allclose(community_probs, ref_probs, rtol=0.1, atol=0.05))

    print("KERNEL_OK")
</pallas_src>

<mosaic_0001>
module attributes {stable_mosaic.version = 11 : i64} {
  func.func @_gcn_layer1_kernel(%arg0: i32, %arg1: memref<128x128xbf16, #tpu.memory_space<vmem>>, %arg2: memref<128x16xbf16, #tpu.memory_space<vmem>>, %arg3: memref<16x64xf32, #tpu.memory_space<vmem>>, %arg4: memref<1x64xf32, #tpu.memory_space<vmem>>, %arg5: memref<128x64xbf16, #tpu.memory_space<vmem>>) attributes {dimension_semantics = [#tpu.dimension_semantics<parallel>], iteration_bounds = array<i64: 1>, scalar_prefetch = 0 : i64, scratch_operands = 0 : i64, tpu.core_type = #tpu.core_type<tc>, window_params = [{transform_indices = @transform_0, window_bounds = array<i64: 128, 128>}, {pipeline_mode = #tpu.pipeline_mode<synchronous>, transform_indices = @transform_1, window_bounds = array<i64: 128, 16>}, {pipeline_mode = #tpu.pipeline_mode<synchronous>, transform_indices = @transform_2, window_bounds = array<i64: 16, 64>}, {pipeline_mode = #tpu.pipeline_mode<synchronous>, transform_indices = @transform_3, window_bounds = array<i64: 1, 64>}, {transform_indices = @transform_4, window_bounds = array<i64: 128, 64>}]} {
    %c0 = arith.constant 0 : index
    %c0_0 = arith.constant 0 : index
    %0 = vector.load %arg1[%c0, %c0_0] : memref<128x128xbf16, #tpu.memory_space<vmem>>, vector<128x128xbf16>
    %c0_1 = arith.constant 0 : index
    %c0_2 = arith.constant 0 : index
    %1 = vector.load %arg2[%c0_1, %c0_2] : memref<128x16xbf16, #tpu.memory_space<vmem>>, vector<128x16xbf16>
    %cst = arith.constant dense<0.000000e+00> : vector<128x16xf32>
    %2 = tpu.matmul %0, %1, %cst {dimension_numbers = #tpu.dot_dimension_numbers<[1], [0], [0], [1], [0, 0, 1, 1], [], []>} : vector<128x128xbf16>, vector<128x16xbf16>, vector<128x16xf32> -> vector<128x16xf32>
    %c0_3 = arith.constant 0 : index
    %c0_4 = arith.constant 0 : index
    %3 = vector.load %arg3[%c0_3, %c0_4] : memref<16x64xf32, #tpu.memory_space<vmem>>, vector<16x64xf32>
    %cst_5 = arith.constant dense<0.000000e+00> : vector<128x64xf32>
    %4 = tpu.matmul %2, %3, %cst_5 {dimension_numbers = #tpu.dot_dimension_numbers<[1], [0], [0], [1], [0, 0, 1, 1], [], []>} : vector<128x16xf32>, vector<16x64xf32>, vector<128x64xf32> -> vector<128x64xf32>
    %c0_6 = arith.constant 0 : index
    %c0_7 = arith.constant 0 : index
    %5 = vector.load %arg4[%c0_6, %c0_7] : memref<1x64xf32, #tpu.memory_space<vmem>>, vector<1x64xf32>
    %6 = vector.broadcast %5 : vector<1x64xf32> to vector<128x64xf32>
    %7 = arith.addf %4, %6 : vector<128x64xf32>
    %cst_8 = arith.constant 0.000000e+00 : f32
    %8 = vector.broadcast %cst_8 : f32 to vector<128x64xf32>
    %9 = arith.maximumf %7, %8 : vector<128x64xf32>
    %10 = arith.truncf %9 : vector<128x64xf32> to vector<128x64xbf16>
    %c0_9 = arith.constant 0 : index
    %c0_10 = arith.constant 0 : index
    %11 = vector.load %arg5[%c0_9, %c0_10] : memref<128x64xbf16, #tpu.memory_space<vmem>>, vector<128x64xbf16>
    tpu.vector_store %arg5[%c0_9, %c0_10], %10 {strides = array<i32>} : memref<128x64xbf16, #tpu.memory_space<vmem>>, vector<128x64xbf16>,
    return
  }
  func.func @transform_0(%arg0: i32) -> (i32, i32) {
    %c0_i32 = arith.constant 0 : i32
    %c0_i32_0 = arith.constant 0 : i32
    return %arg0, %c0_i32 : i32, i32
  }
  func.func @transform_1(%arg0: i32) -> (i32, i32) {
    %c0_i32 = arith.constant 0 : i32
    %c0_i32_0 = arith.constant 0 : i32
    %c0_i32_1 = arith.constant 0 : i32
    return %c0_i32, %c0_i32_0 : i32, i32
  }
  func.func @transform_2(%arg0: i32) -> (i32, i32) {
    %c0_i32 = arith.constant 0 : i32
    %c0_i32_0 = arith.constant 0 : i32
    %c0_i32_1 = arith.constant 0 : i32
    return %c0_i32, %c0_i32_0 : i32, i32
  }
  func.func @transform_3(%arg0: i32) -> (i32, i32) {
    %c0_i32 = arith.constant 0 : i32
    %c0_i32_0 = arith.constant 0 : i32
    %c0_i32_1 = arith.constant 0 : i32
    return %c0_i32, %c0_i32_0 : i32, i32
  }
  func.func @transform_4(%arg0: i32) -> (i32, i32) {
    %c0_i32 = arith.constant 0 : i32
    %c0_i32_0 = arith.constant 0 : i32
    return %arg0, %c0_i32 : i32, i32
  }
}

</mosaic_0001>

<bundles_post_ra>
// kernel: tpu_custom_call.1
= control target key start
LH: loop header
LB: loop body
LE: loop exit
PB: predicated region body
PF: predicated region fallthrough
CT: control target
= control target key end

     0   :  { %9 = vsyncpa [#allocation3], 0  ;;  %s520_s18 = smov [#allocation2]   ;;  %s521_s20 = smov 128   ;;  %s700_s0 = inlined_call_operand.vmem [shape: bf16[128,128], index: 0, kind: input, shape index: {}]   ;;  %s701_s1 = inlined_call_operand.vmem [shape: bf16[128,16], index: 1, kind: input, shape index: {}]   ;;  %s702_s2 = inlined_call_operand.hbm [shape: f32[16,64], index: 2, kind: input, shape index: {}]   ;;  %s703_s3 = inlined_call_operand.vmem [shape: f32[1,64], index: 3, kind: input, shape index: {}]   ;;  %s704_s4 = inlined_call_operand.vmem [shape: bf16[128,64], index: 4, kind: output, shape index: {}]  }
   0x1   :  { %s18_s17 = sshll.u32 %s702_s2, 4  ;;  %s20_s19 = sshll.u32 %s520_s18, 4  ;;  %s19_s17 = int_to_ptr.hbm [resolvable:$true] %s18_s17  ;;  %s21_s19 = int_to_ptr.vmem [resolvable:$true] %s20_s19 }
   0x2   :  { %s522_s21 = smov 8  }
   0x3   :  { %26 = dma.hbm_to_vmem [thread:$0]  %s19_s17, 256, %s21_s19, [#allocation3], %s521_s20, %s521_s20, %s522_s21  }
   0x4   :  { %518 = dma.done.wait [#allocation3], 256  }
   0x5   :  { %519 = vsyncadd [#allocation3], 4294967040  ;;  %v479_v0 = vld [vmem:[%s701_s1 + $0x38] sm:$0xff]  ;;  %v478_v1 = vld [vmem:[%s701_s1 + $0x30] sm:$0xff]  ;;  %vm216_vm0 = vcmask 130048   ;;  %vm362_vm1 = vcmask 519168  }
   0x6   :  { %161 = vmatpush.bf16.msra.mxu0 %v479_v0  ;;  %480 = vmatpush.bf16.msra.mxu2 %v479_v0  ;;  %v477_v2 = vld [vmem:[%s701_s1 + $0x28] sm:$0xff]  ;;  %v476_v3 = vld [vmem:[%s701_s1 + $0x20] sm:$0xff]  ;;  %v475_v4 = vld [vmem:[%s701_s1 + $0x18] sm:$0xff] }
   0x7   :  { %v474_v5 = vld [vmem:[%s701_s1 + $0x10] sm:$0xff]  ;;  %v473_v6 = vld [vmem:[%s701_s1 + $0x8] sm:$0xff]  ;;  %v472_v7 = vld [vmem:[%s701_s1] sm:$0xff] }
   0x8   :  { %v464_v8 = vld [vmem:[%s700_s0] sm:$0xff]  ;;  %v465_v10 = vld [vmem:[%s700_s0 + $0x8] sm:$0xff]  ;;  %v466_v13 = vld [vmem:[%s700_s0 + $0x10] sm:$0xff] }
   0x9   :  { %v468_v9 = vld [vmem:[%s700_s0 + $0x20] sm:$0xff]  ;;  %v469_v11 = vld [vmem:[%s700_s0 + $0x28] sm:$0xff]  ;;  %v470_v14 = vld [vmem:[%s700_s0 + $0x30] sm:$0xff] }
   0xa   :  { %162 = vmatpush.bf16.msra.mxu0 %v478_v1  ;;  %481 = vmatpush.bf16.msra.mxu2 %v478_v1  ;;  %v211_v12 = vld [vmem:[#allocation2 + $0x8] sm:$0xff]  ;;  %v467_v15 = vld [vmem:[%s700_s0 + $0x18] sm:$0xff]  ;;  %v210_v17 = vld [vmem:[#allocation2] sm:$0xff] }
   0xb   :  { %279 = vmatpush.msra.mxu1 %v211_v12  ;;  %488 = vmatpush.msra.mxu3 %v211_v12  ;;  %v471_v16 = vld [vmem:[%s700_s0 + $0x38] sm:$0xff]  ;;  %v618_v34 = vld [vmem:[%s703_s3] ss:$0 sm:$0xff] }
   0xd   :  { %280 = vmatpush.msra.mxu1 %v210_v17  ;;  %489 = vmatpush.msra.mxu3 %v210_v17 }
   0xe   :  { %163 = vmatpush.bf16.msra.mxu0 %v477_v2  ;;  %482 = vmatpush.bf16.msra.mxu2 %v477_v2 }
  0x12   :  { %164 = vmatpush.bf16.msra.mxu0 %v476_v3  ;;  %483 = vmatpush.bf16.msra.mxu2 %v476_v3 }
  0x16   :  { %165 = vmatpush.bf16.msra.mxu0 %v475_v4  ;;  %484 = vmatpush.bf16.msra.mxu2 %v475_v4 }
  0x1a   :  { %166 = vmatpush.bf16.msra.mxu0 %v474_v5  ;;  %485 = vmatpush.bf16.msra.mxu2 %v474_v5 }
  0x1e   :  { %167 = vmatpush.bf16.msra.mxu0 %v473_v6  ;;  %486 = vmatpush.bf16.msra.mxu2 %v473_v6 }
  0x22   :  { %168 = vmatpush.bf16.msra.mxu0 %v472_v7  ;;  %487 = vmatpush.bf16.msra.mxu2 %v472_v7 }
  0x25   :  { %169 = vmatmul.bf16.vlgmr.msra.gmra.mxu0 %v464_v8  ;;  %189 = vmatmul.bf16.vlgmr.msra.gmra.mxu2 %v468_v9 }
  0x35   :  { %174 = vmatmul.bf16.gmra.mxu0 %v465_v10  ;;  %194 = vmatmul.bf16.gmra.mxu2 %v469_v11 }
  0x45   :  { %179 = vmatmul.bf16.gmra.mxu0 %v466_v13  ;;  %199 = vmatmul.bf16.gmra.mxu2 %v470_v14 }
  0x55   :  { %184 = vmatmul.bf16.gmra.mxu0 %v467_v15  ;;  %204 = vmatmul.bf16.gmra.mxu2 %v471_v16 }
  0xa2   :  { %v170_v18 = vpop.f32.mrf.mxu0 }
  0xa3   :  { %448 = vmatmul.msk.f32.vlgmr.msra.gmra.mxu1 %vm216_vm0, %v170_v18 }
  0xa8   :  { %v190_v19 = vpop.f32.mrf.mxu2 }
  0xaa   :  { %v172_v20 = vpop.f32.mrf.mxu0 }
  0xab   :  { %449 = vmatmul.msk.f32.gmra.mxu1 %vm216_vm0, %v172_v20 }
  0xb0   :  { %v192_v21 = vpop.f32.mrf.mxu2 }
  0xb2   :  { %v175_v22 = vpop.f32.mrf.mxu0 }
  0xb3   :  { %450 = vmatmul.msk.f32.gmra.mxu1 %vm216_vm0, %v175_v22 }
  0xb8   :  { %v195_v23 = vpop.f32.mrf.mxu2 }
  0xb9   :  { %458 = vmatmul.msk.f32.vlgmr.msra.gmra.mxu3 %vm216_vm0, %v195_v23 }
  0xba   :  { %v177_v24 = vpop.f32.mrf.mxu0 }
  0xbb   :  { %451 = vmatmul.msk.f32.gmra.mxu1 %vm216_vm0, %v177_v24 }
  0xc0   :  { %v197_v25 = vpop.f32.mrf.mxu2 }
  0xc1   :  { %459 = vmatmul.msk.f32.gmra.mxu3 %vm216_vm0, %v197_v25 }
  0xc2   :  { %v180_v26 = vpop.f32.mrf.mxu0 }
  0xc3   :  { %452 = vmatmul.msk.f32.gmra.mxu1 %vm216_vm0, %v180_v26 }
  0xc8   :  { %v200_v27 = vpop.f32.mrf.mxu2 }
  0xc9   :  { %460 = vmatmul.msk.f32.gmra.mxu3 %vm216_vm0, %v200_v27 }
  0xca   :  { %v182_v28 = vpop.f32.mrf.mxu0 }
  0xcb   :  { %453 = vmatmul.msk.f32.gmra.mxu1 %vm216_vm0, %v182_v28 }
  0xd0   :  { %v202_v29 = vpop.f32.mrf.mxu2 }
  0xd1   :  { %461 = vmatmul.msk.f32.gmra.mxu3 %vm216_vm0, %v202_v29 }
  0xd2   :  { %v185_v30 = vpop.f32.mrf.mxu0 }
  0xd3   :  { %454 = vmatmul.msk.f32.gmra.mxu1 %vm216_vm0, %v185_v30 }
  0xd8   :  { %v205_v31 = vpop.f32.mrf.mxu2 }
  0xd9   :  { %462 = vmatmul.msk.f32.gmra.mxu3 %vm216_vm0, %v205_v31 }
  0xda   :  { %v187_v32 = vpop.f32.mrf.mxu0 }
  0xdb   :  { %455 = vmatmul.msk.f32.gmra.mxu1 %vm216_vm0, %v187_v32 }
  0xe0   :  { %v207_v33 = vpop.f32.mrf.mxu2 }
  0xe1   :  { %463 = vmatmul.msk.f32.gmra.mxu3 %vm216_vm0, %v207_v33 }
  0xe3   :  { %456 = vmatmul.msk.f32.gmra.mxu1 %vm216_vm0, %v190_v19 }
  0xeb   :  { %457 = vmatmul.msk.f32.gmra.mxu1 %vm216_vm0, %v192_v21 }
 0x120   :  { %v282_v35 = vpop.f32.mrf.mxu1 }
 0x121   :  { %v283_v36 = vadd.f32 %v618_v34, %v282_v35 }
 0x123   :  { %v330_v37 = vmax.f32 %v283_v36, 0.0 }
 0x125   :  { %v346_v38 = vpack.c.bf16 %v330_v37, %v330_v37 }
 0x127   :  { %363 = vst.msk [vmem:[%s704_s4] sm:$0xf] %vm362_vm1, %v346_v38 }
 0x128   :  { %v285_v39 = vpop.f32.mrf.mxu1 }
 0x129   :  { %v286_v40 = vadd.f32 %v618_v34, %v285_v39 }
 0x12b   :  { %v331_v41 = vmax.f32 %v286_v40, 0.0 }
 0x12d   :  { %v347_v42 = vpack.c.bf16 %v331_v41, %v331_v41 }
 0x12f   :  { %364 = vst.msk [vmem:[%s704_s4 + $0x4] sm:$0xf] %vm362_vm1, %v347_v42 }
 0x130   :  { %v288_v43 = vpop.f32.mrf.mxu1 }
 0x131   :  { %v289_v44 = vadd.f32 %v618_v34, %v288_v43 }
 0x133   :  { %v332_v45 = vmax.f32 %v289_v44, 0.0 }
 0x135   :  { %v348_v46 = vpack.c.bf16 %v332_v45, %v332_v45 }
 0x137   :  { %365 = vst.msk [vmem:[%s704_s4 + $0x8] sm:$0xf] %vm362_vm1, %v348_v46 }
 0x138   :  { %v291_v47 = vpop.f32.mrf.mxu1 }
 0x139   :  { %v292_v48 = vadd.f32 %v618_v34, %v291_v47 }
 0x13b   :  { %v333_v49 = vmax.f32 %v292_v48, 0.0 }
 0x13c   :  { %v312_v50 = vpop.f32.mrf.mxu3 }
 0x13d   :  { %v349_v51 = vpack.c.bf16 %v333_v49, %v333_v49  ;;  %v313_v52 = vadd.f32 %v618_v34, %v312_v50 }
 0x13f   :  { %366 = vst.msk [vmem:[%s704_s4 + $0xc] sm:$0xf] %vm362_vm1, %v349_v51  ;;  %v340_v53 = vmax.f32 %v313_v52, 0.0 }
 0x140   :  { %v294_v54 = vpop.f32.mrf.mxu1 }
 0x141   :  { %v356_v55 = vpack.c.bf16 %v340_v53, %v340_v53  ;;  %v295_v56 = vadd.f32 %v618_v34, %v294_v54 }
 0x143   :  { %373 = vst.msk [vmem:[%s704_s4 + $0x28] sm:$0xf] %vm362_vm1, %v356_v55  ;;  %v334_v57 = vmax.f32 %v295_v56, 0.0 }
 0x144   :  { %v315_v58 = vpop.f32.mrf.mxu3 }
 0x145   :  { %v350_v59 = vpack.c.bf16 %v334_v57, %v334_v57  ;;  %v316_v60 = vadd.f32 %v618_v34, %v315_v58 }
 0x147   :  { %367 = vst.msk [vmem:[%s704_s4 + $0x10] sm:$0xf] %vm362_vm1, %v350_v59  ;;  %v341_v61 = vmax.f32 %v316_v60, 0.0 }
 0x148   :  { %v297_v62 = vpop.f32.mrf.mxu1 }
 0x149   :  { %v357_v63 = vpack.c.bf16 %v341_v61, %v341_v61  ;;  %v298_v0 = vadd.f32 %v618_v34, %v297_v62 }
 0x14b   :  { %374 = vst.msk [vmem:[%s704_s4 + $0x2c] sm:$0xf] %vm362_vm1, %v357_v63  ;;  %v335_v1 = vmax.f32 %v298_v0, 0.0 }
 0x14c   :  { %v318_v2 = vpop.f32.mrf.mxu3 }
 0x14d   :  { %v351_v3 = vpack.c.bf16 %v335_v1, %v335_v1  ;;  %v319_v4 = vadd.f32 %v618_v34, %v318_v2 }
 0x14f   :  { %368 = vst.msk [vmem:[%s704_s4 + $0x14] sm:$0xf] %vm362_vm1, %v351_v3  ;;  %v342_v5 = vmax.f32 %v319_v4, 0.0 }
 0x150   :  { %v300_v6 = vpop.f32.mrf.mxu1 }
 0x151   :  { %v358_v7 = vpack.c.bf16 %v342_v5, %v342_v5  ;;  %v301_v8 = vadd.f32 %v618_v34, %v300_v6 }
 0x153   :  { %375 = vst.msk [vmem:[%s704_s4 + $0x30] sm:$0xf] %vm362_vm1, %v358_v7  ;;  %v336_v9 = vmax.f32 %v301_v8, 0.0 }
 0x154   :  { %v321_v10 = vpop.f32.mrf.mxu3 }
 0x155   :  { %v352_v11 = vpack.c.bf16 %v336_v9, %v336_v9  ;;  %v322_v12 = vadd.f32 %v618_v34, %v321_v10 }
 0x157   :  { %369 = vst.msk [vmem:[%s704_s4 + $0x18] sm:$0xf] %vm362_vm1, %v352_v11  ;;  %v343_v13 = vmax.f32 %v322_v12, 0.0 }
 0x158   :  { %v303_v14 = vpop.f32.mrf.mxu1 }
 0x159   :  { %v359_v15 = vpack.c.bf16 %v343_v13, %v343_v13  ;;  %v304_v16 = vadd.f32 %v618_v34, %v303_v14 }
 0x15b   :  { %376 = vst.msk [vmem:[%s704_s4 + $0x34] sm:$0xf] %vm362_vm1, %v359_v15  ;;  %v337_v17 = vmax.f32 %v304_v16, 0.0 }
 0x15c   :  { %v324_v18 = vpop.f32.mrf.mxu3 }
 0x15d   :  { %v353_v19 = vpack.c.bf16 %v337_v17, %v337_v17  ;;  %v325_v20 = vadd.f32 %v618_v34, %v324_v18 }
 0x15f   :  { %370 = vst.msk [vmem:[%s704_s4 + $0x1c] sm:$0xf] %vm362_vm1, %v353_v19  ;;  %v344_v21 = vmax.f32 %v325_v20, 0.0 }
 0x160   :  { %v306_v22 = vpop.f32.mrf.mxu1 }
 0x161   :  { %v360_v23 = vpack.c.bf16 %v344_v21, %v344_v21  ;;  %v307_v24 = vadd.f32 %v618_v34, %v306_v22 }
 0x163   :  { %377 = vst.msk [vmem:[%s704_s4 + $0x38] sm:$0xf] %vm362_vm1, %v360_v23  ;;  %v338_v25 = vmax.f32 %v307_v24, 0.0 }
 0x164   :  { %v327_v26 = vpop.f32.mrf.mxu3 }
 0x165   :  { %v354_v27 = vpack.c.bf16 %v338_v25, %v338_v25  ;;  %v328_v28 = vadd.f32 %v618_v34, %v327_v26 }
 0x167   :  { %371 = vst.msk [vmem:[%s704_s4 + $0x20] sm:$0xf] %vm362_vm1, %v354_v27  ;;  %v345_v29 = vmax.f32 %v328_v28, 0.0 }
 0x168   :  { %v309_v30 = vpop.f32.mrf.mxu1 }
 0x169   :  { %v361_v31 = vpack.c.bf16 %v345_v29, %v345_v29  ;;  %v310_v32 = vadd.f32 %v618_v34, %v309_v30 }
 0x16b   :  { %378 = vst.msk [vmem:[%s704_s4 + $0x3c] sm:$0xf] %vm362_vm1, %v361_v31  ;;  %v339_v33 = vmax.f32 %v310_v32, 0.0 }
 0x16d   :  { %v355_v35 = vpack.c.bf16 %v339_v33, %v339_v33 }
 0x16f   :  { %372 = vst.msk [vmem:[%s704_s4 + $0x24] sm:$0xf] %vm362_vm1, %v355_v35 }
 0x170   :  { %383 = vsyncpa [#allocation3], 1 }

</bundles_post_ra>
